<compile_context>
chip_gen: v5e
topology: v5e:2x2
jax: 0.10.0
libtpu: 0.0.40
codegen_flags: <defaults>
</compile_context>

<pallas_src>
import functools

import jax
import jax.numpy as jnp
from jax.experimental import pallas as pl
from jax.experimental.pallas import tpu as pltpu


def _round_up(v, m):
    return (v + m - 1) // m * m


def _lane_shift(x, s):
    """out[:, p] = x[:, p + s]; zeros shifted in at the flat ends (static s)."""
    if s == 0:
        return x
    c = x.shape[0]
    z = jnp.zeros((c, abs(s)), x.dtype)
    if s > 0:
        return jnp.concatenate([x[:, s:], z], axis=-1)
    return jnp.concatenate([z, x[:, :s]], axis=-1)


def _conv3x3_same(x, w, b, H, W):
    """3x3 'SAME' conv on a (Ci, H*W) activation via one (Co, 9*Ci)@(9*Ci, H*W) matmul.

    The spatial axis is flattened row-major onto lanes; the 9 taps are static lane shifts
    with left/right column masks so shifts never leak across image rows, and the flat-end
    zeros of the shift handle the top/bottom rows.
    """
    _, HW = x.shape
    col = jax.lax.broadcasted_iota(jnp.int32, (1, HW), 1) % W
    not_left = col != 0
    not_right = col != (W - 1)

    taps = []
    for ky in (-1, 0, 1):
        for kx in (-1, 0, 1):
            t = _lane_shift(x, ky * W + kx)
            if kx == 1:
                t = jnp.where(not_right, t, 0.0)
            elif kx == -1:
                t = jnp.where(not_left, t, 0.0)
            taps.append(t)
    cols = jnp.concatenate(taps, axis=0)                         # (9*Ci, H*W)
    out = jnp.dot(w, cols, preferred_element_type=jnp.float32)   # (Co_pad, H*W)
    return out + b


def _attention_kernel(x_ref, w1_ref, w2_ref, w3_ref, b1_ref, b2_ref, b3_ref, o_ref,
                      *, H, W):
    x = x_ref[0]                                                 # (Cin, H*W)
    h1 = jnp.maximum(_conv3x3_same(x, w1_ref[...], b1_ref[...], H, W), 0.0)
    h2 = jnp.maximum(_conv3x3_same(h1, w2_ref[...], b2_ref[...], H, W), 0.0)
    h3 = jnp.dot(w3_ref[...], h2, preferred_element_type=jnp.float32) + b3_ref[...]
    o_ref[0] = 1.0 / (1.0 + jnp.exp(-h3))                        # sigmoid, only Cout real rows


def attention_pallas(x_nchw, w1, b1, w2, b2, w3, b3):
    """x_nchw: (N, Cin, H, W); weights in PyTorch OIHW layout, biases 1-D."""
    N, Cin, H, W = x_nchw.shape
    Cmid = w1.shape[0]
    Cout = w3.shape[0]
    HW = H * W
    MID_P = _round_up(max(Cmid, 8), 8)      # sublane-aligned intermediate channel count

    # Raw NCHW bytes, just flattened spatially (no transpose, no channel padding).
    x_flat = x_nchw.reshape(N, Cin, HW).astype(jnp.float32)

    def pack3x3(w, ci_pad, co_pad):         # OIHW (co, ci, 3, 3) -> (co_pad, 9*ci_pad)
        co, ci = w.shape[0], w.shape[1]
        wk = jnp.transpose(w, (0, 2, 3, 1))                       # (co, kh, kw, ci)
        wk = jnp.pad(wk, ((0, co_pad - co), (0, 0), (0, 0), (0, ci_pad - ci)))
        return wk.reshape(co_pad, 9 * ci_pad).astype(jnp.float32)

    w1m = pack3x3(w1, Cin, MID_P)                                 # (MID_P, 9*Cin)
    w2m = pack3x3(w2, MID_P, MID_P)                               # (MID_P, 9*MID_P)
    w3m = jnp.pad(w3[:, :, 0, 0],
                  ((0, 0), (0, MID_P - Cmid))).astype(jnp.float32)  # (Cout, MID_P)
    b1m = jnp.pad(b1, (0, MID_P - Cmid)).reshape(MID_P, 1).astype(jnp.float32)
    b2m = jnp.pad(b2, (0, MID_P - Cmid)).reshape(MID_P, 1).astype(jnp.float32)
    b3m = b3.reshape(Cout, 1).astype(jnp.float32)

    kernel = functools.partial(_attention_kernel, H=H, W=W)

    out = pl.pallas_call(
        kernel,
        out_shape=jax.ShapeDtypeStruct((N, Cout, HW), jnp.float32),
        grid=(N,),
        in_specs=[
            pl.BlockSpec((1, Cin, HW), lambda n: (n, 0, 0)),
            pl.BlockSpec((MID_P, 9 * Cin), lambda n: (0, 0)),
            pl.BlockSpec((MID_P, 9 * MID_P), lambda n: (0, 0)),
            pl.BlockSpec((Cout, MID_P), lambda n: (0, 0)),
            pl.BlockSpec((MID_P, 1), lambda n: (0, 0)),
            pl.BlockSpec((MID_P, 1), lambda n: (0, 0)),
            pl.BlockSpec((Cout, 1), lambda n: (0, 0)),
        ],
        out_specs=pl.BlockSpec((1, Cout, HW), lambda n: (n, 0, 0)),
        compiler_params=pltpu.CompilerParams(
            dimension_semantics=("parallel",)),
    )(x_flat, w1m, w2m, w3m, b1m, b2m, b3m)

    return out.reshape(N, Cout, H, W)


def attention_reference(x, w1, b1, w2, b2, w3, b3):
    dn = ('NCHW', 'OIHW', 'NCHW')
    prec = jax.lax.Precision.HIGHEST
    h = jax.lax.conv_general_dilated(x, w1, (1, 1), ((1, 1), (1, 1)),
                                     dimension_numbers=dn, precision=prec)
    h = jnp.maximum(h + b1.reshape(1, -1, 1, 1), 0.0)
    h = jax.lax.conv_general_dilated(h, w2, (1, 1), ((1, 1), (1, 1)),
                                     dimension_numbers=dn, precision=prec)
    h = jnp.maximum(h + b2.reshape(1, -1, 1, 1), 0.0)
    h = jax.lax.conv_general_dilated(h, w3, (1, 1), 'VALID',
                                     dimension_numbers=dn, precision=prec)
    h = h + b3.reshape(1, -1, 1, 1)
    return 1.0 / (1.0 + jnp.exp(-h))


if __name__ == "__main__":
    N, Cin, H, W = 2, 8, 16, 16
    Cmid = Cin // 2          # Attention.out_channels = in_channels / 2
    Cout = 4                 # conv3 output channels

    key = jax.random.PRNGKey(0)
    kx, k1, k2, k3, kb1, kb2, kb3 = jax.random.split(key, 7)

    x = jax.random.normal(kx, (N, Cin, H, W), jnp.float32)
    w1 = jax.random.normal(k1, (Cmid, Cin, 3, 3), jnp.float32) * (2.0 / (Cin * 9)) ** 0.5
    b1 = jax.random.normal(kb1, (Cmid,), jnp.float32) * 0.1
    w2 = jax.random.normal(k2, (Cmid, Cmid, 3, 3), jnp.float32) * (2.0 / (Cmid * 9)) ** 0.5
    b2 = jax.random.normal(kb2, (Cmid,), jnp.float32) * 0.1
    w3 = jax.random.normal(k3, (Cout, Cmid, 1, 1), jnp.float32) * (2.0 / Cmid) ** 0.5
    b3 = jax.random.normal(kb3, (Cout,), jnp.float32) * 0.1

    out = attention_pallas(x, w1, b1, w2, b2, w3, b3)
    out = jax.block_until_ready(out)

    ref = attention_reference(x, w1, b1, w2, b2, w3, b3)
    assert out.shape == (N, Cout, H, W)
    assert jnp.allclose(out, ref, atol=1e-4, rtol=1e-4), "mismatch vs XLA conv reference"

    print("KERNEL_OK")
</pallas_src>

<mosaic_0001>
module attributes {stable_mosaic.version = 11 : i64} {
  func.func @_attention_kernel(%arg0: i32, %arg1: memref<1x8x256xf32, #tpu.memory_space<vmem>>, %arg2: memref<8x72xf32, #tpu.memory_space<vmem>>, %arg3: memref<8x72xf32, #tpu.memory_space<vmem>>, %arg4: memref<4x8xf32, #tpu.memory_space<vmem>>, %arg5: memref<8x1xf32, #tpu.memory_space<vmem>>, %arg6: memref<8x1xf32, #tpu.memory_space<vmem>>, %arg7: memref<4x1xf32, #tpu.memory_space<vmem>>, %arg8: memref<1x4x256xf32, #tpu.memory_space<vmem>>) attributes {dimension_semantics = [#tpu.dimension_semantics<parallel>], iteration_bounds = array<i64: 2>, scalar_prefetch = 0 : i64, scratch_operands = 0 : i64, tpu.core_type = #tpu.core_type<tc>, window_params = [{transform_indices = @transform_0, window_bounds = array<i64: 1, 8, 256>}, {pipeline_mode = #tpu.pipeline_mode<synchronous>, transform_indices = @transform_1, window_bounds = array<i64: 8, 72>}, {pipeline_mode = #tpu.pipeline_mode<synchronous>, transform_indices = @transform_2, window_bounds = array<i64: 8, 72>}, {pipeline_mode = #tpu.pipeline_mode<synchronous>, transform_indices = @transform_3, window_bounds = array<i64: 4, 8>}, {pipeline_mode = #tpu.pipeline_mode<synchronous>, transform_indices = @transform_4, window_bounds = array<i64: 8, 1>}, {pipeline_mode = #tpu.pipeline_mode<synchronous>, transform_indices = @transform_5, window_bounds = array<i64: 8, 1>}, {pipeline_mode = #tpu.pipeline_mode<synchronous>, transform_indices = @transform_6, window_bounds = array<i64: 4, 1>}, {transform_indices = @transform_7, window_bounds = array<i64: 1, 4, 256>}]} {
    %c0 = arith.constant 0 : index
    %c0_0 = arith.constant 0 : index
    %c0_1 = arith.constant 0 : index
    %0 = vector.load %arg1[%c0, %c0_0, %c0_1] : memref<1x8x256xf32, #tpu.memory_space<vmem>>, vector<1x8x256xf32>
    %1 = vector.shape_cast %0 : vector<1x8x256xf32> to vector<8x256xf32>
    %c0_2 = arith.constant 0 : index
    %c0_3 = arith.constant 0 : index
    %2 = vector.load %arg2[%c0_2, %c0_3] : memref<8x72xf32, #tpu.memory_space<vmem>>, vector<8x72xf32>
    %c0_4 = arith.constant 0 : index
    %c0_5 = arith.constant 0 : index
    %3 = vector.load %arg5[%c0_4, %c0_5] : memref<8x1xf32, #tpu.memory_space<vmem>>, vector<8x1xf32>
    %4 = tpu.iota {dimensions = array<i32: 1>} : vector<1x256xi32>
    %c16_i32 = arith.constant 16 : i32
    %c0_i32 = arith.constant 0 : i32
    %5 = arith.cmpi eq, %c16_i32, %c0_i32 : i32
    %c1_i32 = arith.constant 1 : i32
    %6 = arith.select %5, %c1_i32, %c16_i32 : i32
    %7 = vector.broadcast %6 : i32 to vector<1x256xi32>
    %8 = arith.remsi %4, %7 : vector<1x256xi32>
    %c0_i32_6 = arith.constant 0 : i32
    %9 = vector.broadcast %c0_i32_6 : i32 to vector<1x256xi32>
    %10 = arith.cmpi ne, %8, %9 : vector<1x256xi32>
    %c0_i32_7 = arith.constant 0 : i32
    %11 = vector.broadcast %c0_i32_7 : i32 to vector<1x256xi32>
    %12 = arith.cmpi slt, %8, %11 : vector<1x256xi32>
    %c0_i32_8 = arith.constant 0 : i32
    %13 = arith.cmpi slt, %6, %c0_i32_8 : i32
    %14 = vector.broadcast %13 : i1 to vector<1x256xi1>
    %15 = vector.broadcast %14 : vector<1x256xi1> to vector<1x256xi1>
    %16 = arith.xori %12, %15 : vector<1x256xi1>
    %17 = arith.andi %16, %10 : vector<1x256xi1>
    %18 = vector.broadcast %6 : i32 to vector<1x256xi32>
    %19 = arith.addi %8, %18 : vector<1x256xi32>
    %20 = arith.select %17, %19, %8 : vector<1x256xi1>, vector<1x256xi32>
    %c0_i32_9 = arith.constant 0 : i32
    %21 = vector.broadcast %c0_i32_9 : i32 to vector<1x256xi32>
    %22 = arith.cmpi ne, %20, %21 : vector<1x256xi32>
    %c15_i32 = arith.constant 15 : i32
    %23 = vector.broadcast %c15_i32 : i32 to vector<1x256xi32>
    %24 = arith.cmpi ne, %20, %23 : vector<1x256xi32>
    %cst = arith.constant 0.000000e+00 : f32
    %25 = vector.broadcast %cst : f32 to vector<8x17xf32>
    %26 = vector.extract_strided_slice %1 {offsets = [0, 0], sizes = [8, 239], strides = [1, 1]} : vector<8x256xf32> to vector<8x239xf32>
    %27 = tpu.concatenate %25, %26 in 1 : vector<8x17xf32>, vector<8x239xf32> -> vector<8x256xf32>
    %cst_10 = arith.constant 0.000000e+00 : f32
    %28 = vector.shape_cast %22 : vector<1x256xi1> to vector<1x256xi1>
    %29 = vector.broadcast %28 : vector<1x256xi1> to vector<8x256xi1>
    %30 = vector.broadcast %cst_10 : f32 to vector<8x256xf32>
    %31 = arith.select %29, %27, %30 : vector<8x256xi1>, vector<8x256xf32>
    %cst_11 = arith.constant 0.000000e+00 : f32
    %32 = vector.broadcast %cst_11 : f32 to vector<8x16xf32>
    %33 = vector.extract_strided_slice %1 {offsets = [0, 0], sizes = [8, 240], strides = [1, 1]} : vector<8x256xf32> to vector<8x240xf32>
    %34 = tpu.concatenate %32, %33 in 1 : vector<8x16xf32>, vector<8x240xf32> -> vector<8x256xf32>
    %cst_12 = arith.constant 0.000000e+00 : f32
    %35 = vector.broadcast %cst_12 : f32 to vector<8x15xf32>
    %36 = vector.extract_strided_slice %1 {offsets = [0, 0], sizes = [8, 241], strides = [1, 1]} : vector<8x256xf32> to vector<8x241xf32>
    %37 = tpu.concatenate %35, %36 in 1 : vector<8x15xf32>, vector<8x241xf32> -> vector<8x256xf32>
    %cst_13 = arith.constant 0.000000e+00 : f32
    %38 = vector.shape_cast %24 : vector<1x256xi1> to vector<1x256xi1>
    %39 = vector.broadcast %38 : vector<1x256xi1> to vector<8x256xi1>
    %40 = vector.broadcast %cst_13 : f32 to vector<8x256xf32>
    %41 = arith.select %39, %37, %40 : vector<8x256xi1>, vector<8x256xf32>
    %cst_14 = arith.constant 0.000000e+00 : f32
    %42 = vector.broadcast %cst_14 : f32 to vector<8x1xf32>
    %43 = vector.extract_strided_slice %1 {offsets = [0, 0], sizes = [8, 255], strides = [1, 1]} : vector<8x256xf32> to vector<8x255xf32>
    %44 = tpu.concatenate %42, %43 in 1 : vector<8x1xf32>, vector<8x255xf32> -> vector<8x256xf32>
    %cst_15 = arith.constant 0.000000e+00 : f32
    %45 = vector.shape_cast %22 : vector<1x256xi1> to vector<1x256xi1>
    %46 = vector.broadcast %45 : vector<1x256xi1> to vector<8x256xi1>
    %47 = vector.broadcast %cst_15 : f32 to vector<8x256xf32>
    %48 = arith.select %46, %44, %47 : vector<8x256xi1>, vector<8x256xf32>
    %cst_16 = arith.constant 0.000000e+00 : f32
    %49 = vector.broadcast %cst_16 : f32 to vector<8x1xf32>
    %50 = vector.extract_strided_slice %1 {offsets = [0, 1], sizes = [8, 255], strides = [1, 1]} : vector<8x256xf32> to vector<8x255xf32>
    %51 = tpu.concatenate %50, %49 in 1 : vector<8x255xf32>, vector<8x1xf32> -> vector<8x256xf32>
    %cst_17 = arith.constant 0.000000e+00 : f32
    %52 = vector.shape_cast %24 : vector<1x256xi1> to vector<1x256xi1>
    %53 = vector.broadcast %52 : vector<1x256xi1> to vector<8x256xi1>
    %54 = vector.broadcast %cst_17 : f32 to vector<8x256xf32>
    %55 = arith.select %53, %51, %54 : vector<8x256xi1>, vector<8x256xf32>
    %cst_18 = arith.constant 0.000000e+00 : f32
    %56 = vector.broadcast %cst_18 : f32 to vector<8x15xf32>
    %57 = vector.extract_strided_slice %1 {offsets = [0, 15], sizes = [8, 241], strides = [1, 1]} : vector<8x256xf32> to vector<8x241xf32>
    %58 = tpu.concatenate %57, %56 in 1 : vector<8x241xf32>, vector<8x15xf32> -> vector<8x256xf32>
    %cst_19 = arith.constant 0.000000e+00 : f32
    %59 = vector.shape_cast %22 : vector<1x256xi1> to vector<1x256xi1>
    %60 = vector.broadcast %59 : vector<1x256xi1> to vector<8x256xi1>
    %61 = vector.broadcast %cst_19 : f32 to vector<8x256xf32>
    %62 = arith.select %60, %58, %61 : vector<8x256xi1>, vector<8x256xf32>
    %cst_20 = arith.constant 0.000000e+00 : f32
    %63 = vector.broadcast %cst_20 : f32 to vector<8x16xf32>
    %64 = vector.extract_strided_slice %1 {offsets = [0, 16], sizes = [8, 240], strides = [1, 1]} : vector<8x256xf32> to vector<8x240xf32>
    %65 = tpu.concatenate %64, %63 in 1 : vector<8x240xf32>, vector<8x16xf32> -> vector<8x256xf32>
    %cst_21 = arith.constant 0.000000e+00 : f32
    %66 = vector.broadcast %cst_21 : f32 to vector<8x17xf32>
    %67 = vector.extract_strided_slice %1 {offsets = [0, 17], sizes = [8, 239], strides = [1, 1]} : vector<8x256xf32> to vector<8x239xf32>
    %68 = tpu.concatenate %67, %66 in 1 : vector<8x239xf32>, vector<8x17xf32> -> vector<8x256xf32>
    %cst_22 = arith.constant 0.000000e+00 : f32
    %69 = vector.shape_cast %24 : vector<1x256xi1> to vector<1x256xi1>
    %70 = vector.broadcast %69 : vector<1x256xi1> to vector<8x256xi1>
    %71 = vector.broadcast %cst_22 : f32 to vector<8x256xf32>
    %72 = arith.select %70, %68, %71 : vector<8x256xi1>, vector<8x256xf32>
    %73 = tpu.concatenate %31, %34, %41, %48, %1, %55, %62, %65, %72 in 0 : vector<8x256xf32>, vector<8x256xf32>, vector<8x256xf32>, vector<8x256xf32>, vector<8x256xf32>, vector<8x256xf32>, vector<8x256xf32>, vector<8x256xf32>, vector<8x256xf32> -> vector<72x256xf32>
    %cst_23 = arith.constant dense<0.000000e+00> : vector<8x256xf32>
    %74 = tpu.matmul %2, %73, %cst_23 {dimension_numbers = #tpu.dot_dimension_numbers<[1], [0], [0], [1], [0, 0, 1, 1], [], []>} : vector<8x72xf32>, vector<72x256xf32>, vector<8x256xf32> -> vector<8x256xf32>
    %75 = vector.broadcast %3 : vector<8x1xf32> to vector<8x256xf32>
    %76 = arith.addf %74, %75 : vector<8x256xf32>
    %cst_24 = arith.constant 0.000000e+00 : f32
    %77 = vector.broadcast %cst_24 : f32 to vector<8x256xf32>
    %78 = arith.maximumf %76, %77 : vector<8x256xf32>
    %c0_25 = arith.constant 0 : index
    %c0_26 = arith.constant 0 : index
    %79 = vector.load %arg3[%c0_25, %c0_26] : memref<8x72xf32, #tpu.memory_space<vmem>>, vector<8x72xf32>
    %c0_27 = arith.constant 0 : index
    %c0_28 = arith.constant 0 : index
    %80 = vector.load %arg6[%c0_27, %c0_28] : memref<8x1xf32, #tpu.memory_space<vmem>>, vector<8x1xf32>
    %81 = tpu.iota {dimensions = array<i32: 1>} : vector<1x256xi32>
    %c16_i32_29 = arith.constant 16 : i32
    %c0_i32_30 = arith.constant 0 : i32
    %82 = arith.cmpi eq, %c16_i32_29, %c0_i32_30 : i32
    %c1_i32_31 = arith.constant 1 : i32
    %83 = arith.select %82, %c1_i32_31, %c16_i32_29 : i32
    %84 = vector.broadcast %83 : i32 to vector<1x256xi32>
    %85 = arith.remsi %81, %84 : vector<1x256xi32>
    %c0_i32_32 = arith.constant 0 : i32
    %86 = vector.broadcast %c0_i32_32 : i32 to vector<1x256xi32>
    %87 = arith.cmpi ne, %85, %86 : vector<1x256xi32>
    %c0_i32_33 = arith.constant 0 : i32
    %88 = vector.broadcast %c0_i32_33 : i32 to vector<1x256xi32>
    %89 = arith.cmpi slt, %85, %88 : vector<1x256xi32>
    %c0_i32_34 = arith.constant 0 : i32
    %90 = arith.cmpi slt, %83, %c0_i32_34 : i32
    %91 = vector.broadcast %90 : i1 to vector<1x256xi1>
    %92 = vector.broadcast %91 : vector<1x256xi1> to vector<1x256xi1>
    %93 = arith.xori %89, %92 : vector<1x256xi1>
    %94 = arith.andi %93, %87 : vector<1x256xi1>
    %95 = vector.broadcast %83 : i32 to vector<1x256xi32>
    %96 = arith.addi %85, %95 : vector<1x256xi32>
    %97 = arith.select %94, %96, %85 : vector<1x256xi1>, vector<1x256xi32>
    %c0_i32_35 = arith.constant 0 : i32
    %98 = vector.broadcast %c0_i32_35 : i32 to vector<1x256xi32>
    %99 = arith.cmpi ne, %97, %98 : vector<1x256xi32>
    %c15_i32_36 = arith.constant 15 : i32
    %100 = vector.broadcast %c15_i32_36 : i32 to vector<1x256xi32>
    %101 = arith.cmpi ne, %97, %100 : vector<1x256xi32>
    %cst_37 = arith.constant 0.000000e+00 : f32
    %102 = vector.broadcast %cst_37 : f32 to vector<8x17xf32>
    %103 = vector.extract_strided_slice %78 {offsets = [0, 0], sizes = [8, 239], strides = [1, 1]} : vector<8x256xf32> to vector<8x239xf32>
    %104 = tpu.concatenate %102, %103 in 1 : vector<8x17xf32>, vector<8x239xf32> -> vector<8x256xf32>
    %cst_38 = arith.constant 0.000000e+00 : f32
    %105 = vector.shape_cast %99 : vector<1x256xi1> to vector<1x256xi1>
    %106 = vector.broadcast %105 : vector<1x256xi1> to vector<8x256xi1>
    %107 = vector.broadcast %cst_38 : f32 to vector<8x256xf32>
    %108 = arith.select %106, %104, %107 : vector<8x256xi1>, vector<8x256xf32>
    %cst_39 = arith.constant 0.000000e+00 : f32
    %109 = vector.broadcast %cst_39 : f32 to vector<8x16xf32>
    %110 = vector.extract_strided_slice %78 {offsets = [0, 0], sizes = [8, 240], strides = [1, 1]} : vector<8x256xf32> to vector<8x240xf32>
    %111 = tpu.concatenate %109, %110 in 1 : vector<8x16xf32>, vector<8x240xf32> -> vector<8x256xf32>
    %cst_40 = arith.constant 0.000000e+00 : f32
    %112 = vector.broadcast %cst_40 : f32 to vector<8x15xf32>
    %113 = vector.extract_strided_slice %78 {offsets = [0, 0], sizes = [8, 241], strides = [1, 1]} : vector<8x256xf32> to vector<8x241xf32>
    %114 = tpu.concatenate %112, %113 in 1 : vector<8x15xf32>, vector<8x241xf32> -> vector<8x256xf32>
    %cst_41 = arith.constant 0.000000e+00 : f32
    %115 = vector.shape_cast %101 : vector<1x256xi1> to vector<1x256xi1>
    %116 = vector.broadcast %115 : vector<1x256xi1> to vector<8x256xi1>
    %117 = vector.broadcast %cst_41 : f32 to vector<8x256xf32>
    %118 = arith.select %116, %114, %117 : vector<8x256xi1>, vector<8x256xf32>
    %cst_42 = arith.constant 0.000000e+00 : f32
    %119 = vector.broadcast %cst_42 : f32 to vector<8x1xf32>
    %120 = vector.extract_strided_slice %78 {offsets = [0, 0], sizes = [8, 255], strides = [1, 1]} : vector<8x256xf32> to vector<8x255xf32>
    %121 = tpu.concatenate %119, %120 in 1 : vector<8x1xf32>, vector<8x255xf32> -> vector<8x256xf32>
    %cst_43 = arith.constant 0.000000e+00 : f32
    %122 = vector.shape_cast %99 : vector<1x256xi1> to vector<1x256xi1>
    %123 = vector.broadcast %122 : vector<1x256xi1> to vector<8x256xi1>
    %124 = vector.broadcast %cst_43 : f32 to vector<8x256xf32>
    %125 = arith.select %123, %121, %124 : vector<8x256xi1>, vector<8x256xf32>
    %cst_44 = arith.constant 0.000000e+00 : f32
    %126 = vector.broadcast %cst_44 : f32 to vector<8x1xf32>
    %127 = vector.extract_strided_slice %78 {offsets = [0, 1], sizes = [8, 255], strides = [1, 1]} : vector<8x256xf32> to vector<8x255xf32>
    %128 = tpu.concatenate %127, %126 in 1 : vector<8x255xf32>, vector<8x1xf32> -> vector<8x256xf32>
    %cst_45 = arith.constant 0.000000e+00 : f32
    %129 = vector.shape_cast %101 : vector<1x256xi1> to vector<1x256xi1>
    %130 = vector.broadcast %129 : vector<1x256xi1> to vector<8x256xi1>
    %131 = vector.broadcast %cst_45 : f32 to vector<8x256xf32>
    %132 = arith.select %130, %128, %131 : vector<8x256xi1>, vector<8x256xf32>
    %cst_46 = arith.constant 0.000000e+00 : f32
    %133 = vector.broadcast %cst_46 : f32 to vector<8x15xf32>
    %134 = vector.extract_strided_slice %78 {offsets = [0, 15], sizes = [8, 241], strides = [1, 1]} : vector<8x256xf32> to vector<8x241xf32>
    %135 = tpu.concatenate %134, %133 in 1 : vector<8x241xf32>, vector<8x15xf32> -> vector<8x256xf32>
    %cst_47 = arith.constant 0.000000e+00 : f32
    %136 = vector.shape_cast %99 : vector<1x256xi1> to vector<1x256xi1>
    %137 = vector.broadcast %136 : vector<1x256xi1> to vector<8x256xi1>
    %138 = vector.broadcast %cst_47 : f32 to vector<8x256xf32>
    %139 = arith.select %137, %135, %138 : vector<8x256xi1>, vector<8x256xf32>
    %cst_48 = arith.constant 0.000000e+00 : f32
    %140 = vector.broadcast %cst_48 : f32 to vector<8x16xf32>
    %141 = vector.extract_strided_slice %78 {offsets = [0, 16], sizes = [8, 240], strides = [1, 1]} : vector<8x256xf32> to vector<8x240xf32>
    %142 = tpu.concatenate %141, %140 in 1 : vector<8x240xf32>, vector<8x16xf32> -> vector<8x256xf32>
    %cst_49 = arith.constant 0.000000e+00 : f32
    %143 = vector.broadcast %cst_49 : f32 to vector<8x17xf32>
    %144 = vector.extract_strided_slice %78 {offsets = [0, 17], sizes = [8, 239], strides = [1, 1]} : vector<8x256xf32> to vector<8x239xf32>
    %145 = tpu.concatenate %144, %143 in 1 : vector<8x239xf32>, vector<8x17xf32> -> vector<8x256xf32>
    %cst_50 = arith.constant 0.000000e+00 : f32
    %146 = vector.shape_cast %101 : vector<1x256xi1> to vector<1x256xi1>
    %147 = vector.broadcast %146 : vector<1x256xi1> to vector<8x256xi1>
    %148 = vector.broadcast %cst_50 : f32 to vector<8x256xf32>
    %149 = arith.select %147, %145, %148 : vector<8x256xi1>, vector<8x256xf32>
    %150 = tpu.concatenate %108, %111, %118, %125, %78, %132, %139, %142, %149 in 0 : vector<8x256xf32>, vector<8x256xf32>, vector<8x256xf32>, vector<8x256xf32>, vector<8x256xf32>, vector<8x256xf32>, vector<8x256xf32>, vector<8x256xf32>, vector<8x256xf32> -> vector<72x256xf32>
    %cst_51 = arith.constant dense<0.000000e+00> : vector<8x256xf32>
    %151 = tpu.matmul %79, %150, %cst_51 {dimension_numbers = #tpu.dot_dimension_numbers<[1], [0], [0], [1], [0, 0, 1, 1], [], []>} : vector<8x72xf32>, vector<72x256xf32>, vector<8x256xf32> -> vector<8x256xf32>
    %152 = vector.broadcast %80 : vector<8x1xf32> to vector<8x256xf32>
    %153 = arith.addf %151, %152 : vector<8x256xf32>
    %cst_52 = arith.constant 0.000000e+00 : f32
    %154 = vector.broadcast %cst_52 : f32 to vector<8x256xf32>
    %155 = arith.maximumf %153, %154 : vector<8x256xf32>
    %c0_53 = arith.constant 0 : index
    %c0_54 = arith.constant 0 : index
    %156 = vector.load %arg4[%c0_53, %c0_54] : memref<4x8xf32, #tpu.memory_space<vmem>>, vector<4x8xf32>
    %cst_55 = arith.constant dense<0.000000e+00> : vector<4x256xf32>
    %157 = tpu.matmul %156, %155, %cst_55 {dimension_numbers = #tpu.dot_dimension_numbers<[1], [0], [0], [1], [0, 0, 1, 1], [], []>} : vector<4x8xf32>, vector<8x256xf32>, vector<4x256xf32> -> vector<4x256xf32>
    %c0_56 = arith.constant 0 : index
    %c0_57 = arith.constant 0 : index
    %158 = vector.load %arg7[%c0_56, %c0_57] : memref<4x1xf32, #tpu.memory_space<vmem>>, vector<4x1xf32>
    %159 = vector.broadcast %158 : vector<4x1xf32> to vector<4x256xf32>
    %160 = arith.addf %157, %159 : vector<4x256xf32>
    %cst_58 = arith.constant 0.000000e+00 : f32
    %161 = vector.broadcast %cst_58 : f32 to vector<4x256xf32>
    %162 = arith.subf %161, %160 : vector<4x256xf32>
    %163 = math.exp %162 : vector<4x256xf32>
    %cst_59 = arith.constant 1.000000e+00 : f32
    %164 = vector.broadcast %cst_59 : f32 to vector<4x256xf32>
    %165 = arith.addf %164, %163 : vector<4x256xf32>
    %cst_60 = arith.constant 1.000000e+00 : f32
    %166 = vector.broadcast %cst_60 : f32 to vector<4x256xf32>
    %167 = arith.divf %166, %165 : vector<4x256xf32>
    %c0_61 = arith.constant 0 : index
    %c0_62 = arith.constant 0 : index
    %c0_63 = arith.constant 0 : index
    %168 = vector.load %arg8[%c0_61, %c0_62, %c0_63] : memref<1x4x256xf32, #tpu.memory_space<vmem>>, vector<1x4x256xf32>
    %169 = vector.shape_cast %168 : vector<1x4x256xf32> to vector<4x256xf32>
    %170 = vector.shape_cast %167 : vector<4x256xf32> to vector<1x4x256xf32>
    tpu.vector_store %arg8[%c0_61, %c0_62, %c0_63], %170 {strides = array<i32>} : memref<1x4x256xf32, #tpu.memory_space<vmem>>, vector<1x4x256xf32>,
    return
  }
  func.func @transform_0(%arg0: i32) -> (i32, i32, i32) {
    %c0_i32 = arith.constant 0 : i32
    %c0_i32_0 = arith.constant 0 : i32
    %c0_i32_1 = arith.constant 0 : i32
    return %arg0, %c0_i32, %c0_i32_0 : i32, i32, i32
  }
  func.func @transform_1(%arg0: i32) -> (i32, i32) {
    %c0_i32 = arith.constant 0 : i32
    %c0_i32_0 = arith.constant 0 : i32
    %c0_i32_1 = arith.constant 0 : i32
    return %c0_i32, %c0_i32_0 : i32, i32
  }
  func.func @transform_2(%arg0: i32) -> (i32, i32) {
    %c0_i32 = arith.constant 0 : i32
    %c0_i32_0 = arith.constant 0 : i32
    %c0_i32_1 = arith.constant 0 : i32
    return %c0_i32, %c0_i32_0 : i32, i32
  }
  func.func @transform_3(%arg0: i32) -> (i32, i32) {
    %c0_i32 = arith.constant 0 : i32
    %c0_i32_0 = arith.constant 0 : i32
    %c0_i32_1 = arith.constant 0 : i32
    return %c0_i32, %c0_i32_0 : i32, i32
  }
  func.func @transform_4(%arg0: i32) -> (i32, i32) {
    %c0_i32 = arith.constant 0 : i32
    %c0_i32_0 = arith.constant 0 : i32
    %c0_i32_1 = arith.constant 0 : i32
    return %c0_i32, %c0_i32_0 : i32, i32
  }
  func.func @transform_5(%arg0: i32) -> (i32, i32) {
    %c0_i32 = arith.constant 0 : i32
    %c0_i32_0 = arith.constant 0 : i32
    %c0_i32_1 = arith.constant 0 : i32
    return %c0_i32, %c0_i32_0 : i32, i32
  }
  func.func @transform_6(%arg0: i32) -> (i32, i32) {
    %c0_i32 = arith.constant 0 : i32
    %c0_i32_0 = arith.constant 0 : i32
    %c0_i32_1 = arith.constant 0 : i32
    return %c0_i32, %c0_i32_0 : i32, i32
  }
  func.func @transform_7(%arg0: i32) -> (i32, i32, i32) {
    %c0_i32 = arith.constant 0 : i32
    %c0_i32_0 = arith.constant 0 : i32
    %c0_i32_1 = arith.constant 0 : i32
    return %arg0, %c0_i32, %c0_i32_0 : i32, i32, i32
  }
}

</mosaic_0001>

<bundles_post_ra>
// kernel: tpu_custom_call.1
= control target key start
LH: loop header
LB: loop body
LE: loop exit
PB: predicated region body
PF: predicated region fallthrough
CT: control target
= control target key end

     0   :  { %12 = vsyncpa [#allocation3], 0  ;;  %s1356_s0 = inlined_call_operand.hbm [shape: f32[2,8,256], index: 0, kind: input, shape index: {}]   ;;  %s1357_s1 = inlined_call_operand.vmem [shape: f32[8,72], index: 1, kind: input, shape index: {}]   ;;  %s1358_s2 = inlined_call_operand.vmem [shape: f32[8,72], index: 2, kind: input, shape index: {}]   ;;  %s1359_s3 = inlined_call_operand.vmem [shape: f32[4,8], index: 3, kind: input, shape index: {}]   ;;  %s1360_s4 = inlined_call_operand.vmem [shape: f32[8,1], index: 4, kind: input, shape index: {}]   ;;  %s1361_s5 = inlined_call_operand.vmem [shape: f32[8,1], index: 5, kind: input, shape index: {}]   ;;  %s1362_s6 = inlined_call_operand.vmem [shape: f32[4,1], index: 6, kind: input, shape index: {}]   ;;  %s1363_s7 = inlined_call_operand.hbm [shape: f32[2,4,256], index: 7, kind: output, shape index: {}]  }
   0x1   :  { %14 = vsyncpa [#allocation3 + $0x1], 0 }
   0x2   :  { %15 = vsyncpa [#allocation4], 0 }
   0x3   :  { %17 = vsyncpa [#allocation4 + $0x1], 0  ;;  %s1054_s24 = smov 0   ;;  %s1056_s25 = smov 0  }
   0x4   :  { %s1058_s26 = smov 0   ;;  %s1060_s27 = smov 0  }
   0x5 LB: > { %s1075_s28 = sadd.s32 4294967295, %s1003_s27   ;;  %s790_s29 = sadd.s32 4294967294, %s1003_s27   ;;  %s1003_s27 = sphi %s1060_s27, %s1387_s27   ;;  %s999_s26 = sphi %s1058_s26, %s1386_s26   ;;  %s995_s25 = sphi %s1056_s25, %s1385_s25   ;;  %s991_s24 = sphi %s1054_s24, %s1384_s24  }
   0x6   : > { %s1079_s30 = sadd.s32 1, %s1003_s27   ;;  %s30_s8 = sadd.s32 1, %s999_s26 }
   0x7   : > { %s27_s9 = ssub.s32 %s1003_s27, %s1079_s30  ;;  %p37_p0 = scmp.ne.s32.totalorder %s999_s26, %s995_s25 }
   0x8   : > { %p28_p1 = scmp.eq.s32.totalorder %s27_s9, 0  ;;  %p38_p2 = scmp.eq.s32.totalorder %s1003_s27, 0 }
   0x9   : > { %p43_p3 = scmp.ne.s32.totalorder %s995_s25, %s991_s24  ;;  %p44_p4 = scmp.eq.s32.totalorder %s1075_s28, 0 }
   0xa   : > { %s1091_s10 = scalar_select %p28_p1, %s999_s26, %s30_s8  }
   0xb   : > { %p1093_p5 = por %p38_p2, %p37_p0  ;;  %p1097_p6 = por %p44_p4, %p43_p3 }
   0xc   : > { %1364 = sst [smem:[#allocation8_spill]] %s1091_s10  ;;  %p193_p7 = scmp.eq.s32.totalorder %s1075_s28, 1 }
   0xd   : > { %p199_p8 = scmp.eq.s32.totalorder %s790_s29, 1  ;;  %p854_p10 = scmp.lt.s32.totalorder %s1003_s27, 2 }
   0xe   : > { %p1104_p11 = por %p193_p7, %p37_p0  ;;  %s237_s15 = sand.u32 1, %s999_s26  }
   0xf   : > { %p1108_p12 = por %p199_p8, %p43_p3  ;;  %s840_s16 = sshll.u32 %s1003_s27, 4 }
  0x10   : > { %s793_s17 = sshll.u32 %s237_s15, 4  ;;  %s246_s20 = scalar_lea.hbm %s1356_s0, %s840_s16 }
  0x11   : > { %s248_s21 = sshll.u32 %s246_s20, 4  ;;  %s241_s22 = scalar_lea.vmem [#allocation2], %s793_s17  ;;  %s249_s21 = int_to_ptr.hbm [resolvable:$true] %s248_s21 }
  0x12   : > { %s250_s23 = sshll.u32 %s241_s22, 4  ;;  %p1119_p13 = pnand %p854_p10, %p1093_p5  ;;  %s251_s23 = int_to_ptr.vmem [resolvable:$true] %s250_s23 }
  0x13   : > { %p796_p0 = scmp.ge.s32.totalorder %s1003_s27, 1  ;;  %p255_p1 = scmp.lt.s32.totalorder %s1003_s27, 3 }
  0x14   : > { %s238_s8 = scalar_lea.sflag [#allocation3], %s237_s15  ;;  %s907_s9 = sshra.s32 %s249_s21, 4  ;;  %s908_s9 = int_to_ptr.hbm [resolvable:$true] %s907_s9 }
  0x15   : > { %s909_s10 = scalar_lea.hbm %s908_s9, 16  ;;  %p911_p3 = pneg %p1119_p13 }
  0x16   : > { %p910_p2 = scmp.ne.s32.totalorder %s908_s9, %s909_s10  ;;  %s914_s11 = scalar_lea.hbm %s1356_s0, 32 }
  0x17   : > { %p915_p5 = scmp.lt.s32.totalorder %s908_s9, %s1356_s0  ;;  %p916_p8 = scmp.lt.s32.totalorder %s914_s11, %s909_s10 }
  0x18   : > { %p912_p4 = pnand %p911_p3, %p910_p2 }
  0x19   : > { %p917_p10 = por %p916_p8, %p915_p5 }
  0x1a   : > { %p913_p7 = pneg %p912_p4 }
  0x1c   : > { %p918_p9 = pnand %p917_p10, %p913_p7 }
  0x1e   : > { %921 = shalt.err (!%p918_p9)
}
  0x1f   : > { %849 = dma.hbm_to_vmem [thread:$0]  (!%p1119_p13), %s249_s21, 256, %s251_s23, %s238_s8  }
  0x20   : > { %p256_p2 = pnand %p796_p0, %p255_p1 }
  0x21   : > { %s1140_s15 = sand.u32 (!%p256_p2), 1, %s995_s25  }
  0x22   : > { %259 = sbr.rel (%p256_p2) target bundleno = 779 (0x30b), region = 48  ;;  %s797_s20 = sshll.u32 (!%p256_p2), %s1140_s15, 4 }
  0x23   : > { %s262_s10 = scalar_lea.sflag (!%p256_p2), [#allocation3], %s1140_s15  ;;  %s265_s22 = scalar_lea.vmem (!%p256_p2), [#allocation2], %s797_s20 }
  0x27   : > { %982 = dma.done.wait (%p1097_p6), %s262_s10, 256  }
  0x28   : > { %984 = vsyncadd (%p1097_p6), %s262_s10, 4294967040  ;;  %v298_v0 = vld [vmem:[%s265_s22 + $0x8] sm:$0xff]  ;;  %s1005_s21 = smov 112   ;;  %s1006_s23 = smov 111   ;;  %v1150_v1 = vld [vmem:[%s265_s22] sm:$0xff]  ;;  %v301_v2 = vlaneseq  ;;  %vm419_vm0 = vcmask 908288  }
  0x29   : > { %408 = vrot.lane.b32.xlu1 %v298_v0, %s1005_s21  ;;  %417 = vrot.lane.b32.xlu0 %v298_v0, %s1006_s23  ;;  %s1007_s29 = smov 113   ;;  %s1008_s12 = smov 127   ;;  %vm410_vm2 = vcmask 916480   ;;  %vm399_vm3 = vcmask 924672   ;;  %vm388_vm4 = vcmask 1039360   ;;  %v300_v22 = vld [vmem:[%s1360_s4] sm:$0xff] }
  0x2a   : > { %406 = vrot.lane.b32.xlu2 %v1150_v1, %s1005_s21  ;;  %s1009_s8 = smov 1   ;;  %s1010_s9 = smov 15   ;;  %v302_v3 = vand.u32 127, %v301_v2  ;;  %v1013_v23 = vmov 0   ;;  %vm377_vm8 = vcmask 7168   ;;  %vm362_vm9 = vcmask 121856  }
  0x2b   : > { %s1011_s16 = smov 16   ;;  %s1012_s17 = smov 17   ;;  %897 = vset.pattern.permute.xlu1 %v1013_v23  ;;  %898 = vset.pattern.permute.xlu0 %v1013_v23  ;;  %vm353_vm10 = vcmask 130048   ;;  %vm338_vm11 = vcmask 138240   ;;  %v299_v42 = vld [vmem:[%s1357_s1] sm:$0xff]  ;;  %vm431_vm13 = vcmask 588800  }
  0x2c   : > { %v303_v5 = vadd.s32 128, %v302_v3  ;;  %v308_v12 = vand.u32 15, %v302_v3  ;;  %vm1227_vm12 = vmneg %vm353_vm10  ;;  %v608_v52 = vld [vmem:[%s1362_s6] sm:$0xf]  ;;  %vm614_vm14 = vcmask 64512   ;;  %s704_s22 = scalar_lea.sflag [#allocation4], %s1140_s15 }
  0x2d   : > { %v477_v13 = vld [vmem:[%s1358_s2] sm:$0xff] }
  0x2e   : > { %v315_v6 = vand.u32 15, %v303_v5  ;;  %vm1182_vm5 = vcmp.ne.s32.totalorder %v308_v12, 15  ;;  %vm1203_vm7 = vcmp.ne.s32.totalorder %v308_v12, 0 }
  0x30   : > { %vm1174_vm1 = vcmp.ne.s32.totalorder %v315_v6, 15  ;;  %vm1186_vm6 = vcmp.ne.s32.totalorder %v315_v6, 0 }
  0x31   : > { %397 = vrot.lane.b32.xlu1 %v298_v0, %s1007_s29  ;;  %415 = vrot.lane.b32.xlu0 %v1150_v1, %s1006_s23 }
  0x32   : > { %386 = vrot.lane.b32.xlu2 %v298_v0, %s1008_s12 }
  0x39   : > { %384 = vrot.lane.b32.xlu1 %v1150_v1, %s1008_s12  ;;  %395 = vrot.lane.b32.xlu0 %v1150_v1, %s1007_s29 }
  0x3a   : > { %373 = vrot.lane.b32.xlu2 %v1150_v1, %s1009_s8 }
  0x41   : > { %358 = vrot.lane.b32.xlu1 %v1150_v1, %s1010_s9  ;;  %375 = vrot.lane.b32.xlu0 %v298_v0, %s1009_s8 }
  0x42   : > { %360 = vrot.lane.b32.xlu2 %v298_v0, %s1010_s9 }
  0x49   : > { %351 = vrot.lane.b32.xlu1 %v298_v0, %s1011_s16  ;;  %349 = vrot.lane.b32.xlu0 %v1150_v1, %s1011_s16 }
  0x4a   : > { %334 = vrot.lane.b32.xlu2 %v1150_v1, %s1012_s17 }
  0x51   : > { %336 = vrot.lane.b32.xlu0 %v298_v0, %s1012_s17  ;;  %428 = vperm.xlu1 %897, %v300_v22  }
  0x84   : > { %v407_v4 = vpop.permute.xlu2 %406 }
  0x8c   : > { %v387_v8 = vpop.permute.xlu2 %386 }
  0x8d   : > { %v392_v19 = vsel %vm388_vm4, %v387_v8, 0.0 }
  0x94   : > { %v374_v20 = vpop.permute.xlu2 %373 }
  0x95   : > { %v381_v30 = vsel %vm377_vm8, 0.0, %v374_v20 }
  0x9b   : > { %v409_v9 = vpop.permute.xlu1 %408  ;;  %v418_v10 = vpop.permute.xlu0 %417 }
  0x9c   : > { %v423_v11 = vsel %vm419_vm0, %v418_v10, 0.0  ;;  %v411_v21 = vsel %vm410_vm2, %v407_v4, %v409_v9  ;;  %v361_v29 = vpop.permute.xlu2 %360 }
  0x9d   : > { %808 = vmatpush.msk.msra.mxu1 %vm1174_vm1, %v423_v11 }
  0x9f   : > { %809 = vmatpush.msk.msra.mxu1 %vm410_vm2, %v409_v9 }
  0xa3   : > { %v398_v15 = vpop.permute.xlu1 %397  ;;  %v416_v16 = vpop.permute.xlu0 %415 }
  0xa4   : > { %v420_v17 = vsel %vm419_vm0, %v416_v16, %v418_v10  ;;  %v403_v18 = vsel %vm399_vm3, %v398_v15, 0.0  ;;  %v335_v36 = vpop.permute.xlu2 %334 }
  0xa5   : > { %799 = vmatpush.msk.msra.mxu0 %vm1182_vm5, %v420_v17  ;;  %810 = vmatpush.msk.msra.mxu1 %vm1186_vm6, %v403_v18  ;;  %v342_v40 = vsel %vm338_vm11, 0.0, %v335_v36 }
  0xa7   : > { %443 = vmatpush.msra.mxu0 %v411_v21  ;;  %811 = vmatpush.msk.msra.mxu1 %vm1174_vm1, %v392_v19 }
  0xa9   : > { %466 = vmatpush.msra.mxu1 %v298_v0 }
  0xab   : > { %v385_v25 = vpop.permute.xlu1 %384  ;;  %v396_v26 = vpop.permute.xlu0 %395 }
  0xac   : > { %v400_v27 = vsel %vm399_vm3, %v396_v26, %v398_v15  ;;  %v389_v28 = vsel %vm388_vm4, %v385_v25, %v387_v8 }
  0xad   : > { %800 = vmatpush.msk.msra.mxu0 %vm1203_vm7, %v400_v27 }
  0xaf   : > { %801 = vmatpush.msk.msra.mxu0 %vm1182_vm5, %v389_v28 }
  0xb1   : > { %446 = vmatpush.msra.mxu0 %v1150_v1  ;;  %v478_v1 = vld [vmem:[%s1361_s5] sm:$0xff] }
  0xb3   : > { %v359_v31 = vpop.permute.xlu1 %358  ;;  %802 = vmatpush.msk.msra.mxu0 %vm1203_vm7, %v381_v30  ;;  %v376_v32 = vpop.permute.xlu0 %375  ;;  %v607_v30 = vld [vmem:[%s1359_s3] sm:$0xf] }
  0xb4   : > { %v378_v33 = vsel %vm377_vm8, %v374_v20, %v376_v32  ;;  %v366_v34 = vsel %vm362_vm9, 0.0, %v359_v31  ;;  %v363_v35 = vsel %vm362_vm9, %v359_v31, %v361_v29 }
  0xb5   : > { %812 = vmatpush.msk.msra.mxu1 %vm1186_vm6, %v378_v33  ;;  %803 = vmatpush.msk.msra.mxu0 %vm1182_vm5, %v366_v34 }
  0xb7   : > { %813 = vmatpush.msk.msra.mxu1 %vm1174_vm1, %v363_v35 }
  0xbb   : > { %v352_v38 = vpop.permute.xlu1 %351  ;;  %v350_v39 = vpop.permute.xlu0 %349 }
  0xbc   : > { %805 = vmatpush.msk.msra.mxu0 %vm1227_vm12, %v350_v39  ;;  %v354_v41 = vsel %vm353_vm10, %v350_v39, %v352_v38 }
  0xbd   : > { %469 = vmatpush.msra.mxu1 %v354_v41 }
  0xbe   : > { %806 = vmatpush.msk.msra.mxu0 %vm1203_vm7, %v342_v40 }
  0xbf   : > { %807 = vmatmul.msk.f32.vlgmr.msra.gmra.mxu0 %vm431_vm13, %v299_v42 }
  0xc3   : > { %v337_v43 = vpop.permute.xlu0 %336  ;;  %v429_v45 = vpop.permute.xlu1 %428 }
  0xc4   : > { %v339_v44 = vsel %vm338_vm11, %v335_v36, %v337_v43 }
  0xc5   : > { %814 = vmatpush.msk.msra.mxu1 %vm1186_vm6, %v339_v44 }
  0xc6   : > { %815 = vmatmul.msk.f32.vlgmr.msra.gmra.mxu1 %vm431_vm13, %v299_v42 }
 0x13c   : > { %v452_v46 = vpop.f32.mrf.mxu0 }
 0x13d   : > { %v453_v47 = vadd.f32 %v452_v46, %v429_v45 }
 0x13f   : > { %v475_v48 = vmax.f32 %v453_v47, 0.0 }
 0x141   : > { %547 = vrot.lane.b32.xlu0 %v475_v48, %s1006_s23 }
 0x143   : > { %v472_v49 = vpop.f32.mrf.mxu1 }
 0x144   : > { %v473_v50 = vadd.f32 %v472_v49, %v429_v45 }
 0x146   : > { %v476_v51 = vmax.f32 %v473_v50, 0.0 }
 0x148   : > { %541 = vrot.lane.b32.xlu1 %v476_v51, %s1005_s21  ;;  %549 = vrot.lane.b32.xlu2 %v476_v51, %s1006_s23 }
 0x149   : > { %539 = vrot.lane.b32.xlu0 %v475_v48, %s1005_s21 }
 0x150   : > { %521 = vrot.lane.b32.xlu1 %v476_v51, %s1008_s12  ;;  %531 = vrot.lane.b32.xlu2 %v476_v51, %s1007_s29 }
 0x151   : > { %519 = vrot.lane.b32.xlu0 %v475_v48, %s1008_s12 }
 0x158   : > { %509 = vrot.lane.b32.xlu1 %v475_v48, %s1009_s8  ;;  %529 = vrot.lane.b32.xlu2 %v475_v48, %s1007_s29 }
 0x159   : > { %499 = vrot.lane.b32.xlu0 %v475_v48, %s1010_s9 }
 0x160   : > { %501 = vrot.lane.b32.xlu1 %v476_v51, %s1010_s9  ;;  %511 = vrot.lane.b32.xlu2 %v476_v51, %s1009_s8  ;;  %s957_s8 = scalar_lea.hbm %s1363_s7, 16 }
 0x161   : > { %493 = vrot.lane.b32.xlu0 %v476_v51, %s1011_s16 }
 0x168   : > { %481 = vrot.lane.b32.xlu1 %v475_v48, %s1012_s17  ;;  %491 = vrot.lane.b32.xlu2 %v475_v48, %s1011_s16  ;;  %s798_s16 = sshll.u32 %s1140_s15, 3 }
 0x169   : > { %559 = vperm.xlu0 %898, %v478_v1  }
 0x170   : > { %611 = vperm.xlu1 %897, %v608_v52   ;;  %483 = vrot.lane.b32.xlu2 %v476_v51, %s1012_s17  ;;  %s841_s17 = sshll.u32 %s1075_s28, 3  ;;  %s296_s28 = scalar_lea.vmem [#allocation5], %s798_s16 }
 0x171   : > { %s715_s19 = scalar_lea.hbm %s1363_s7, %s841_s17  ;;  %s717_s20 = sshll.u32 %s296_s28, 4  ;;  %s718_s20 = int_to_ptr.vmem [resolvable:$true] %s717_s20 }
 0x172   : > { %s719_s10 = sshll.u32 %s715_s19, 4  ;;  %s720_s10 = int_to_ptr.hbm [resolvable:$true] %s719_s10 }
 0x173   : > { %s951_s21 = sshra.s32 %s720_s10, 4  ;;  %s952_s21 = int_to_ptr.hbm [resolvable:$true] %s951_s21 }
 0x174   : > { %s953_s23 = scalar_lea.hbm %s952_s21, 8  ;;  %p958_p0 = scmp.lt.s32.totalorder %s952_s21, %s1363_s7 }
 0x175   : > { %p954_p6 = scmp.ne.s32.totalorder %s952_s21, %s953_s23  ;;  %p959_p1 = scmp.lt.s32.totalorder %s957_s8, %s953_s23 }
 0x177   : > { %p955_p9 = pnand %p954_p6, %p1104_p11  ;;  %p960_p3 = por %p959_p1, %p958_p0 }
 0x179   : > { %p956_p13 = pneg %p955_p9 }
 0x17b   : > { %p961_p4 = pnand %p960_p3, %p956_p13 }
 0x1a2   : > { %v550_v53 = vpop.permute.xlu2 %549 }
 0x1a3   : > { %v554_v54 = vsel %vm419_vm0, %v550_v53, 0.0 }
 0x1a4   : > { %825 = vmatpush.msk.msra.mxu3 %vm1174_vm1, %v554_v54 }
 0x1aa   : > { %v532_v55 = vpop.permute.xlu2 %531 }
 0x1ab   : > { %v536_v62 = vsel %vm399_vm3, %v532_v55, 0.0 }
 0x1b2   : > { %v530_v59 = vpop.permute.xlu2 %529 }
 0x1b3   : > { %v548_v56 = vpop.permute.xlu0 %547  ;;  %v533_v63 = vsel %vm399_vm3, %v530_v59, %v532_v55 }
 0x1b4   : > { %v551_v57 = vsel %vm419_vm0, %v548_v56, %v550_v53 }
 0x1b5   : > { %816 = vmatpush.msk.msra.mxu2 %vm1182_vm5, %v551_v57 }
 0x1ba   : > { %v542_v58 = vpop.permute.xlu1 %541  ;;  %v512_v5 = vpop.permute.xlu2 %511 }
 0x1bb   : > { %826 = vmatpush.msk.msra.mxu3 %vm410_vm2, %v542_v58  ;;  %v540_v60 = vpop.permute.xlu0 %539 }
 0x1bc   : > { %v543_v61 = vsel %vm410_vm2, %v540_v60, %v542_v58 }
 0x1bd   : > { %573 = vmatpush.msra.mxu2 %v543_v61  ;;  %827 = vmatpush.msk.msra.mxu3 %vm1186_vm6, %v536_v62 }
 0x1bf   : > { %817 = vmatpush.msk.msra.mxu2 %vm1203_vm7, %v533_v63 }
 0x1c2   : > { %v522_v0 = vpop.permute.xlu1 %521  ;;  %v492_v12 = vpop.permute.xlu2 %491 }
 0x1c3   : > { %v520_v2 = vpop.permute.xlu0 %519  ;;  %v526_v3 = vsel %vm388_vm4, %v522_v0, 0.0 }
 0x1c4   : > { %828 = vmatpush.msk.msra.mxu3 %vm1174_vm1, %v526_v3  ;;  %v523_v4 = vsel %vm388_vm4, %v520_v2, %v522_v0 }
 0x1c5   : > { %818 = vmatpush.msk.msra.mxu2 %vm1182_vm5, %v523_v4 }
 0x1c6   : > { %596 = vmatpush.msra.mxu3 %v476_v51 }
 0x1c7   : > { %576 = vmatpush.msra.mxu2 %v475_v48 }
 0x1ca   : > { %v510_v6 = vpop.permute.xlu1 %509  ;;  %v484_v19 = vpop.permute.xlu2 %483 }
 0x1cb   : > { %v500_v8 = vpop.permute.xlu0 %499  ;;  %v516_v9 = vsel %vm377_vm8, 0.0, %v510_v6  ;;  %v513_v10 = vsel %vm377_vm8, %v510_v6, %v512_v5 }
 0x1cc   : > { %819 = vmatpush.msk.msra.mxu2 %vm1203_vm7, %v516_v9  ;;  %829 = vmatpush.msk.msra.mxu3 %vm1186_vm6, %v513_v10  ;;  %v506_v11 = vsel %vm362_vm9, 0.0, %v500_v8 }
 0x1ce   : > { %820 = vmatpush.msk.msra.mxu2 %vm1182_vm5, %v506_v11 }
 0x1d0   : > { %822 = vmatpush.msk.msra.mxu2 %vm1227_vm12, %v492_v12 }
 0x1d2   : > { %v502_v15 = vpop.permute.xlu1 %501 }
 0x1d3   : > { %v494_v16 = vpop.permute.xlu0 %493  ;;  %v503_v17 = vsel %vm362_vm9, %v500_v8, %v502_v15 }
 0x1d4   : > { %830 = vmatpush.msk.msra.mxu3 %vm1174_vm1, %v503_v17  ;;  %v495_v18 = vsel %vm353_vm10, %v492_v12, %v494_v16 }
 0x1d6   : > { %599 = vmatpush.msra.mxu3 %v495_v18 }
 0x1da   : > { %v482_v20 = vpop.permute.xlu1 %481 }
 0x1db   : > { %v488_v21 = vsel %vm338_vm11, 0.0, %v482_v20  ;;  %v485_v22 = vsel %vm338_vm11, %v482_v20, %v484_v19  ;;  %v560_v7 = vpop.permute.xlu0 %559 }
 0x1dc   : > { %823 = vmatpush.msk.msra.mxu2 %vm1203_vm7, %v488_v21  ;;  %831 = vmatpush.msk.msra.mxu3 %vm1186_vm6, %v485_v22  ;;  %vm699_vm6 = vcmask 1043456  }
 0x1dd   : > { %824 = vmatmul.msk.f32.vlgmr.msra.gmra.mxu2 %vm431_vm13, %v477_v13  ;;  %832 = vmatmul.msk.f32.vlgmr.msra.gmra.mxu3 %vm431_vm13, %v477_v13 }
 0x1e2   : > { %v612_v14 = vpop.permute.xlu1 %611 }
 0x260   : > { %v582_v23 = vpop.f32.mrf.mxu2  ;;  %v602_v25 = vpop.f32.mrf.mxu3 }
 0x261   : > { %v583_v26 = vadd.f32 %v582_v23, %v560_v7  ;;  %v603_v27 = vadd.f32 %v602_v25, %v560_v7 }
 0x263   : > { %v605_v28 = vmax.f32 %v583_v26, 0.0  ;;  %v606_v29 = vmax.f32 %v603_v27, 0.0 }
 0x265   : > { %633 = vmatpush.msrb.mxu0 %v605_v28  ;;  %653 = vmatpush.msrb.mxu1 %v606_v29 }
 0x266   : > { %833 = vmatmul.msk.f32.vlgmr.msrb.gmra.mxu0 %vm614_vm14, %v607_v30  ;;  %834 = vmatmul.msk.f32.vlgmr.msrb.gmra.mxu1 %vm614_vm14, %v607_v30 }
 0x2e3   : > { %v635_v24 = vpop.f32.mrf.mxu0  ;;  %v655_v31 = vpop.f32.mrf.mxu1 }
 0x2e4   : > { %v636_v32 = vadd.f32 %v635_v24, %v612_v14  ;;  %v656_v33 = vadd.f32 %v655_v31, %v612_v14 }
 0x2e6   : > { %v658_v34 = vsub.f32 0.0, %v636_v32  ;;  %v659_v35 = vsub.f32 0.0, %v656_v33 }
 0x2e8   : > { %v660_v36 = vmul.f32 1.442695, %v658_v34  ;;  %v662_v37 = vmul.f32 1.442695, %v659_v35 }
 0x2ea   : > { %899 = vpow2.f32 %v660_v36 }
 0x2eb   : > { %901 = vpow2.f32 %v662_v37 }
 0x2f0   : > { %v900_v38 = vpop.eup %899 }
 0x2f1   : > { %v902_v39 = vpop.eup %901  ;;  %v664_v40 = vadd.f32 1.0, %v900_v38 }
 0x2f2   : > { %v665_v41 = vadd.f32 1.0, %v902_v39 }
 0x2f3   : > { %903 = vrcp.f32 %v664_v40  ;;  %vm671_vm1 = vweird.f32 %v664_v40  ;;  %v677_v53 = vand.u32 2147483648, %v664_v40  ;;  %v675_v55 = vand.u32 2147483647, %v664_v40 }
 0x2f4   : > { %905 = vrcp.f32 %v665_v41  ;;  %v692_v49 = vand.u32 2147483648, %v665_v41  ;;  %v690_v51 = vand.u32 2147483647, %v665_v41  ;;  %vm686_vm2 = vweird.f32 %v665_v41 }
 0x2f5   : > { %v678_v60 = vor.u32 1.1754944e-38, %v677_v53  ;;  %vm676_vm7 = vcmp.eq.f32.partialorder %v675_v55, 8.507059e+37 }
 0x2f6   : > { %v693_v57 = vor.u32 1.1754944e-38, %v692_v49  ;;  %vm691_vm5 = vcmp.eq.f32.partialorder %v690_v51, 8.507059e+37 }
 0x2f9   : > { %v904_v42 = vpop.eup %903 }
 0x2fa   : > { %v906_v43 = vpop.eup %905  ;;  %v667_v44 = vmul.f32 %v904_v42, %v664_v40  ;;  %vm672_vm15 = vweird.f32 %v904_v42 }
 0x2fb   : > { %v682_v45 = vmul.f32 %v906_v43, %v665_v41  ;;  %vm687_vm0 = vweird.f32 %v906_v43  ;;  %vm1321_vm3 = vmor %vm671_vm1, %vm672_vm15 }
 0x2fc   : > { %v668_v46 = vsub.f32 1.0, %v667_v44  ;;  %vm688_vm4 = vmor %vm686_vm2, %vm687_vm0 }
 0x2fd   : > { %v683_v47 = vsub.f32 1.0, %v682_v45 }
 0x2fe   : > { %v669_v48 = vmul.f32 %v904_v42, %v668_v46 }
 0x2ff   : > { %v684_v50 = vmul.f32 %v906_v43, %v683_v47 }
 0x300   : > { %v670_v52 = vadd.f32 %v904_v42, %v669_v48 }
 0x301   : > { %v685_v56 = vadd.f32 %v906_v43, %v684_v50 }
 0x302   : > { %v674_v58 = vsel %vm1321_vm3, %v904_v42, %v670_v52 }
 0x303   : > { %v689_v59 = vsel %vm688_vm4, %v906_v43, %v685_v56  ;;  %v679_v63 = vsel %vm676_vm7, %v678_v60, %v674_v58 }
 0x304   : > { %v694_v61 = vsel %vm691_vm5, %v693_v57, %v689_v59 }
 0x305   : > { %v698_v62 = vrot.slane %v694_v61, 4 }
 0x307   : > { %v700_v0 = vsel %vm699_vm6, %v679_v63, %v698_v62 }
 0x308   : > { %702 = vst [vmem:[%s296_s28] sm:$0xff] %v700_v0 }
 0x309   : > { %964 = shalt.err (!%p961_p4)
}
 0x30a   : > { %844 = dma.vmem_to_hbm [thread:$0]  (%p1104_p11), %s718_s20, 128, %s720_s10, %s704_s22  }
 0x30b PF: > { %s731_s15 = sand.u32 1, %s991_s24   ;;  %p1382_p7 = scmp.ge.s32.totalorder %s1003_s27, 2 }
 0x30c   : > { %s732_s17 = scalar_lea.sflag [#allocation4], %s731_s15 }
 0x30d   : > { %p851_p5 = pnand %p1382_p7, %p1108_p12 }
 0x30f   : > { %p852_p8 = pneg %p851_p5 }
 0x311   : > { %986 = dma.done.wait (%p852_p8), %s732_s17, 128  }
 0x312   : > { %988 = vsyncadd (%p852_p8), %s732_s17, 4294967168  ;;  %s1383_s11 = sld [smem:[#allocation8_spill]]  ;;  %p20_p10 = scmp.ge.s32.totalorder %s1079_s30, 4  }
 0x313   : > { %s1384_s24 = smov %s995_s25  ;;  %s1385_s25 = smov %s999_s26 }
 0x314   : > { %s1387_s27 = smov %s1079_s30  ;;  %22 = sbr.rel (!%p20_p10) target bundleno = 5 (0x5), region = 93 }
 0x318   : > { %s1386_s26 = smov %s1383_s11 }
 0x319   :  { %738 = vsyncpa [#allocation3], 1 }
 0x31a   :  { %740 = vsyncpa [#allocation3 + $0x1], 1 }
 0x31b   :  { %741 = vsyncpa [#allocation4], 1 }
 0x31c   :  { %743 = vsyncpa [#allocation4 + $0x1], 1 }

</bundles_post_ra>
